<compile_context>
chip_gen: v7x
topology: tpu7x:2x2x1
jax: 0.10.0
libtpu: 0.0.40
codegen_flags: <defaults>
</compile_context>

<pallas_src>
import functools
import math

import jax
import jax.numpy as jnp
import numpy as np
from jax import lax
from jax.experimental import pallas as pl
from jax.experimental.pallas import tpu as pltpu

LN_EPS = 1e-5
# Scoped-VMEM budget safe on all generations (v7x has only 64 MiB physical).
VMEM_LIMIT_BYTES = 32 * 1024 * 1024


def _pick_tile(dim, target, align):
    """Largest tile <= target that is a multiple of `align` and divides `dim`.

    Falls back to the full dimension, which is always a legal block size."""
    if dim <= target:
        return dim
    t = (min(target, dim) // align) * align
    while t >= align:
        if dim % t == 0:
            return t
        t -= align
    return dim


# ----------------------------------------------------------------------------
# LayerNorm kernel
# ----------------------------------------------------------------------------
def _layernorm_kernel(x_ref, g_ref, b_ref, o_ref):
    x = x_ref[...].astype(jnp.float32)
    mean = jnp.mean(x, axis=-1, keepdims=True)
    xc = x - mean
    var = jnp.mean(xc * xc, axis=-1, keepdims=True)
    inv = lax.rsqrt(var + LN_EPS)
    y = xc * inv * g_ref[...].astype(jnp.float32) + b_ref[...].astype(jnp.float32)
    o_ref[...] = y.astype(o_ref.dtype)


def pallas_layernorm(x, gamma, beta):
    M, C = x.shape
    tm = _pick_tile(M, 256, 8)
    return pl.pallas_call(
        _layernorm_kernel,
        out_shape=jax.ShapeDtypeStruct((M, C), x.dtype),
        grid=(M // tm,),
        in_specs=[
            pl.BlockSpec((tm, C), lambda i: (i, 0)),
            pl.BlockSpec((1, C), lambda i: (0, 0)),
            pl.BlockSpec((1, C), lambda i: (0, 0)),
        ],
        out_specs=pl.BlockSpec((tm, C), lambda i: (i, 0)),
        compiler_params=pltpu.CompilerParams(
            dimension_semantics=("parallel",),
            vmem_limit_bytes=VMEM_LIMIT_BYTES),
    )(x, gamma.reshape(1, C), beta.reshape(1, C))


# ----------------------------------------------------------------------------
# Tiled linear kernel: y = act(x @ W + b) [+ residual]
# ----------------------------------------------------------------------------
def _linear_kernel(x_ref, w_ref, b_ref, *rest, activation, has_residual):
    if has_residual:
        r_ref, o_ref, acc_ref = rest
    else:
        r_ref = None
        o_ref, acc_ref = rest

    @pl.when(pl.program_id(2) == 0)
    def _():
        acc_ref[...] = jnp.zeros_like(acc_ref)

    acc_ref[...] += jnp.dot(x_ref[...], w_ref[...],
                            preferred_element_type=jnp.float32)

    @pl.when(pl.program_id(2) == pl.num_programs(2) - 1)
    def _():
        y = acc_ref[...] + b_ref[...].astype(jnp.float32)
        if activation == "gelu_tanh":
            c = 0.7978845608028654  # sqrt(2 / pi)
            y = 0.5 * y * (1.0 + jnp.tanh(c * (y + 0.044715 * (y * y * y))))
        if has_residual:
            y = y + r_ref[...].astype(jnp.float32)
        o_ref[...] = y.astype(o_ref.dtype)


def pallas_linear(x, w, b, *, residual=None, activation=None,
                  tm_target=256, tn_target=256, tk_target=512):
    M, K = x.shape
    K2, N = w.shape
    assert K == K2
    tm = _pick_tile(M, tm_target, 8)
    tn = _pick_tile(N, tn_target, 128)
    tk = _pick_tile(K, tk_target, 128)

    in_specs = [
        pl.BlockSpec((tm, tk), lambda i, j, k: (i, k)),
        pl.BlockSpec((tk, tn), lambda i, j, k: (k, j)),
        pl.BlockSpec((1, tn), lambda i, j, k: (0, j)),
    ]
    args = [x, w, b.reshape(1, N)]
    if residual is not None:
        in_specs.append(pl.BlockSpec((tm, tn), lambda i, j, k: (i, j)))
        args.append(residual)

    kernel = functools.partial(_linear_kernel, activation=activation,
                               has_residual=residual is not None)
    return pl.pallas_call(
        kernel,
        out_shape=jax.ShapeDtypeStruct((M, N), x.dtype),
        grid=(M // tm, N // tn, K // tk),
        in_specs=in_specs,
        out_specs=pl.BlockSpec((tm, tn), lambda i, j, k: (i, j)),
        scratch_shapes=[pltpu.VMEM((tm, tn), jnp.float32)],
        compiler_params=pltpu.CompilerParams(
            dimension_semantics=("parallel", "parallel", "arbitrary"),
            vmem_limit_bytes=VMEM_LIMIT_BYTES),
    )(*args)


# ----------------------------------------------------------------------------
# Flash-style causal attention kernel.
# q/k/v/o blocks are (tq_or_tkv, C) lane-dense tiles; heads are sliced inside.
# Grid = (B, num_q_blocks, num_kv_blocks); kv is the (last) reduction axis.
# ----------------------------------------------------------------------------
def _flash_attn_kernel(q_ref, k_ref, v_ref, o_ref, m_sc, l_sc, acc_sc,
                       *, scale, n_head, head_dim, tq, tkv):
    qi = pl.program_id(1)
    ki = pl.program_id(2)

    @pl.when(ki == 0)
    def _():
        m_sc[...] = jnp.full_like(m_sc, -jnp.inf)
        l_sc[...] = jnp.zeros_like(l_sc)
        acc_sc[...] = jnp.zeros_like(acc_sc)

    q_start = qi * tq
    kv_start = ki * tkv

    # Skip KV blocks that lie entirely above the causal diagonal.
    @pl.when(kv_start <= q_start + (tq - 1))
    def _():
        row = q_start + lax.broadcasted_iota(jnp.int32, (tq, tkv), 0)
        col = kv_start + lax.broadcasted_iota(jnp.int32, (tq, tkv), 1)
        causal = col <= row

        for h in range(n_head):                       # static unroll over heads
            hs = h * head_dim
            q = q_ref[:, hs:hs + head_dim].astype(jnp.float32) * scale  # (tq, hd)
            k = k_ref[:, hs:hs + head_dim].astype(jnp.float32)          # (tkv, hd)
            v = v_ref[:, hs:hs + head_dim].astype(jnp.float32)          # (tkv, hd)

            # Contract head_dim directly — no k.T materialization.
            s = lax.dot_general(q, k, (((1,), (1,)), ((), ())),
                                preferred_element_type=jnp.float32)     # (tq, tkv)
            s = jnp.where(causal, s, jnp.float32(-1e30))

            m_prev = m_sc[h]                                            # (tq, 1)
            m_new = jnp.maximum(m_prev, jnp.max(s, axis=-1, keepdims=True))
            alpha = jnp.exp(m_prev - m_new)
            p = jnp.exp(s - m_new)                                      # (tq, tkv)

            l_sc[h] = alpha * l_sc[h] + jnp.sum(p, axis=-1, keepdims=True)
            acc_sc[h] = alpha * acc_sc[h] + jnp.dot(
                p, v, preferred_element_type=jnp.float32)
            m_sc[h] = m_new

    @pl.when(ki == pl.num_programs(2) - 1)
    def _():
        inv_l = pl.reciprocal(l_sc[...], approx=True)   # EUP slot, (H, tq, 1)
        for h in range(n_head):
            hs = h * head_dim
            o_ref[:, hs:hs + head_dim] = (acc_sc[h] * inv_l[h]).astype(o_ref.dtype)


def pallas_flash_attention(q, k, v, n_head):
    B, T, C = q.shape
    head_dim = C // n_head
    tq = _pick_tile(T, 128, 8)
    tkv = _pick_tile(T, 128, 8)

    q_spec = pl.BlockSpec((pl.Squeezed(), tq, C), lambda b, qi, ki: (b, qi, 0))
    kv_spec = pl.BlockSpec((pl.Squeezed(), tkv, C), lambda b, qi, ki: (b, ki, 0))
    o_spec = pl.BlockSpec((pl.Squeezed(), tq, C), lambda b, qi, ki: (b, qi, 0))

    kernel = functools.partial(
        _flash_attn_kernel, scale=1.0 / math.sqrt(head_dim),
        n_head=n_head, head_dim=head_dim, tq=tq, tkv=tkv)

    return pl.pallas_call(
        kernel,
        out_shape=jax.ShapeDtypeStruct((B, T, C), q.dtype),
        grid=(B, T // tq, T // tkv),
        in_specs=[q_spec, kv_spec, kv_spec],
        out_specs=o_spec,
        scratch_shapes=[
            pltpu.VMEM((n_head, tq, 1), jnp.float32),         # running max
            pltpu.VMEM((n_head, tq, 1), jnp.float32),         # running sum
            pltpu.VMEM((n_head, tq, head_dim), jnp.float32),  # output accumulator
        ],
        compiler_params=pltpu.CompilerParams(
            dimension_semantics=("parallel", "parallel", "arbitrary"),
            vmem_limit_bytes=VMEM_LIMIT_BYTES),
    )(q, k, v)


# ----------------------------------------------------------------------------
# Full transformer Block forward
# ----------------------------------------------------------------------------
def block_forward(x, params, n_head):
    B, T, C = x.shape
    M = B * T
    x2 = x.reshape(M, C)

    # ---- x = x + attn(ln_1(x)) ----
    h = pallas_layernorm(x2, params["ln1_g"], params["ln1_b"])
    w_attn, b_attn = params["w_attn"], params["b_attn"]
    q = pallas_linear(h, w_attn[:, 0 * C:1 * C], b_attn[0 * C:1 * C])
    k = pallas_linear(h, w_attn[:, 1 * C:2 * C], b_attn[1 * C:2 * C])
    v = pallas_linear(h, w_attn[:, 2 * C:3 * C], b_attn[2 * C:3 * C])
    y = pallas_flash_attention(q.reshape(B, T, C), k.reshape(B, T, C),
                               v.reshape(B, T, C), n_head)
    x2 = pallas_linear(y.reshape(M, C), params["w_proj"], params["b_proj"],
                       residual=x2)                       # fused residual add

    # ---- x = x + mlp(ln_2(x)) ----
    h = pallas_layernorm(x2, params["ln2_g"], params["ln2_b"])
    h = pallas_linear(h, params["w_fc"], params["b_fc"], activation="gelu_tanh")
    x2 = pallas_linear(h, params["w_proj2"], params["b_proj2"], residual=x2)

    return x2.reshape(B, T, C)


# ----------------------------------------------------------------------------
# Pure-JAX reference for verification
# ----------------------------------------------------------------------------
def reference_block(x, params, n_head):
    B, T, C = x.shape
    hd = C // n_head

    def ln(z, g, b):
        mu = jnp.mean(z, axis=-1, keepdims=True)
        var = jnp.mean((z - mu) ** 2, axis=-1, keepdims=True)
        return (z - mu) / jnp.sqrt(var + LN_EPS) * g + b

    def attn(z):
        qkv = z @ params["w_attn"] + params["b_attn"]
        q, k, v = jnp.split(qkv, 3, axis=-1)
        q = q.reshape(B, T, n_head, hd).transpose(0, 2, 1, 3)
        k = k.reshape(B, T, n_head, hd).transpose(0, 2, 1, 3)
        v = v.reshape(B, T, n_head, hd).transpose(0, 2, 1, 3)
        s = jnp.einsum("bhqd,bhkd->bhqk", q, k) / math.sqrt(hd)
        mask = jnp.tril(jnp.ones((T, T), dtype=bool))
        s = jnp.where(mask[None, None], s, -jnp.inf)
        p = jax.nn.softmax(s, axis=-1)
        y = jnp.einsum("bhqk,bhkd->bhqd", p, v)
        y = y.transpose(0, 2, 1, 3).reshape(B, T, C)
        return y @ params["w_proj"] + params["b_proj"]

    def mlp(z):
        h = z @ params["w_fc"] + params["b_fc"]
        h = jax.nn.gelu(h, approximate=True)
        return h @ params["w_proj2"] + params["b_proj2"]

    x = x + attn(ln(x, params["ln1_g"], params["ln1_b"]))
    x = x + mlp(ln(x, params["ln2_g"], params["ln2_b"]))
    return x


def make_params(key, C):
    ks = jax.random.split(key, 12)
    n = lambda k, shape, s: jax.random.normal(k, shape, jnp.float32) * s
    return {
        "ln1_g": 1.0 + n(ks[0], (C,), 0.1),
        "ln1_b": n(ks[1], (C,), 0.1),
        "w_attn": n(ks[2], (C, 3 * C), 0.02),
        "b_attn": n(ks[3], (3 * C,), 0.02),
        "w_proj": n(ks[4], (C, C), 0.02),
        "b_proj": n(ks[5], (C,), 0.02),
        "ln2_g": 1.0 + n(ks[6], (C,), 0.1),
        "ln2_b": n(ks[7], (C,), 0.1),
        "w_fc": n(ks[8], (C, 4 * C), 0.02),
        "b_fc": n(ks[9], (4 * C,), 0.02),
        "w_proj2": n(ks[10], (4 * C, C), 0.02),
        "b_proj2": n(ks[11], (C,), 0.02),
    }


if __name__ == "__main__":
    # Tiny config (full-array blocks) and a moderate config that exercises the
    # tiled linears, KV blocking and the causal block-skip path.
    for (B, T, C, n_head) in [(2, 8, 32, 4), (2, 256, 128, 4)]:
        key = jax.random.PRNGKey(0)
        kx, kp = jax.random.split(key)
        x = jax.random.normal(kx, (B, T, C), dtype=jnp.float32)
        params = make_params(kp, C)

        out = jax.block_until_ready(block_forward(x, params, n_head))
        ref = reference_block(x, params, n_head)
        # Tolerance accounts for the approximate (EUP) reciprocal in softmax.
        np.testing.assert_allclose(np.asarray(out), np.asarray(ref),
                                   rtol=1e-2, atol=1e-2)

    print("KERNEL_OK")
</pallas_src>

<mosaic_0001>
module attributes {stable_mosaic.version = 11 : i64} {
  func.func @_layernorm_kernel(%arg0: i32, %arg1: memref<16x32xf32, #tpu.memory_space<vmem>>, %arg2: memref<1x32xf32, #tpu.memory_space<vmem>>, %arg3: memref<1x32xf32, #tpu.memory_space<vmem>>, %arg4: memref<16x32xf32, #tpu.memory_space<vmem>>) attributes {dimension_semantics = [#tpu.dimension_semantics<parallel>], iteration_bounds = array<i64: 1>, scalar_prefetch = 0 : i64, scratch_operands = 0 : i64, tpu.core_type = #tpu.core_type<tc>, window_params = [{transform_indices = @transform_0, window_bounds = array<i64: 16, 32>}, {pipeline_mode = #tpu.pipeline_mode<synchronous>, transform_indices = @transform_1, window_bounds = array<i64: 1, 32>}, {pipeline_mode = #tpu.pipeline_mode<synchronous>, transform_indices = @transform_2, window_bounds = array<i64: 1, 32>}, {transform_indices = @transform_3, window_bounds = array<i64: 16, 32>}]} {
    %c0 = arith.constant 0 : index
    %c0_0 = arith.constant 0 : index
    %0 = vector.load %arg1[%c0, %c0_0] : memref<16x32xf32, #tpu.memory_space<vmem>>, vector<16x32xf32>
    %cst = arith.constant dense<0.000000e+00> : vector<16xf32>
    %1 = vector.multi_reduction <add>, %0, %cst [1] : vector<16x32xf32> to vector<16xf32>
    %2 = vector.shape_cast %1 : vector<16xf32> to vector<16x1xf32>
    %cst_1 = arith.constant 3.200000e+01 : f32
    %3 = vector.broadcast %cst_1 : f32 to vector<16x1xf32>
    %4 = arith.divf %2, %3 : vector<16x1xf32>
    %5 = vector.broadcast %4 : vector<16x1xf32> to vector<16x32xf32>
    %6 = arith.subf %0, %5 : vector<16x32xf32>
    %7 = arith.mulf %6, %6 : vector<16x32xf32>
    %cst_2 = arith.constant dense<0.000000e+00> : vector<16xf32>
    %8 = vector.multi_reduction <add>, %7, %cst_2 [1] : vector<16x32xf32> to vector<16xf32>
    %9 = vector.shape_cast %8 : vector<16xf32> to vector<16x1xf32>
    %cst_3 = arith.constant 3.200000e+01 : f32
    %10 = vector.broadcast %cst_3 : f32 to vector<16x1xf32>
    %11 = arith.divf %9, %10 : vector<16x1xf32>
    %cst_4 = arith.constant 9.99999974E-6 : f32
    %12 = vector.broadcast %cst_4 : f32 to vector<16x1xf32>
    %13 = arith.addf %11, %12 : vector<16x1xf32>
    %14 = math.rsqrt %13 : vector<16x1xf32>
    %15 = vector.broadcast %14 : vector<16x1xf32> to vector<16x32xf32>
    %16 = arith.mulf %6, %15 : vector<16x32xf32>
    %c0_5 = arith.constant 0 : index
    %c0_6 = arith.constant 0 : index
    %17 = vector.load %arg2[%c0_5, %c0_6] : memref<1x32xf32, #tpu.memory_space<vmem>>, vector<1x32xf32>
    %18 = vector.broadcast %17 : vector<1x32xf32> to vector<16x32xf32>
    %19 = arith.mulf %16, %18 : vector<16x32xf32>
    %c0_7 = arith.constant 0 : index
    %c0_8 = arith.constant 0 : index
    %20 = vector.load %arg3[%c0_7, %c0_8] : memref<1x32xf32, #tpu.memory_space<vmem>>, vector<1x32xf32>
    %21 = vector.broadcast %20 : vector<1x32xf32> to vector<16x32xf32>
    %22 = arith.addf %19, %21 : vector<16x32xf32>
    %c0_9 = arith.constant 0 : index
    %c0_10 = arith.constant 0 : index
    %23 = vector.load %arg4[%c0_9, %c0_10] : memref<16x32xf32, #tpu.memory_space<vmem>>, vector<16x32xf32>
    tpu.vector_store %arg4[%c0_9, %c0_10], %22 {strides = array<i32>} : memref<16x32xf32, #tpu.memory_space<vmem>>, vector<16x32xf32>,
    return
  }
  func.func @transform_0(%arg0: i32) -> (i32, i32) {
    %c0_i32 = arith.constant 0 : i32
    %c0_i32_0 = arith.constant 0 : i32
    return %arg0, %c0_i32 : i32, i32
  }
  func.func @transform_1(%arg0: i32) -> (i32, i32) {
    %c0_i32 = arith.constant 0 : i32
    %c0_i32_0 = arith.constant 0 : i32
    %c0_i32_1 = arith.constant 0 : i32
    return %c0_i32, %c0_i32_0 : i32, i32
  }
  func.func @transform_2(%arg0: i32) -> (i32, i32) {
    %c0_i32 = arith.constant 0 : i32
    %c0_i32_0 = arith.constant 0 : i32
    %c0_i32_1 = arith.constant 0 : i32
    return %c0_i32, %c0_i32_0 : i32, i32
  }
  func.func @transform_3(%arg0: i32) -> (i32, i32) {
    %c0_i32 = arith.constant 0 : i32
    %c0_i32_0 = arith.constant 0 : i32
    return %arg0, %c0_i32 : i32, i32
  }
}

</mosaic_0001>

<bundles_post_ra>
// kernel: tpu_custom_call.1
= control target key start
LH: loop header
LB: loop body
LE: loop exit
PB: predicated region body
PF: predicated region fallthrough
CT: control target
= control target key end

     0   :  { %8 = vsyncpa [#allocation3], 0  ;;  %s220_s0 = inlined_call_operand.hbm [shape: f32[16,32], index: 0, kind: input, shape index: {}]   ;;  %s221_s1 = inlined_call_operand.vmem [shape: f32[1,32], index: 1, kind: input, shape index: {}]   ;;  %s222_s2 = inlined_call_operand.vmem [shape: f32[1,32], index: 2, kind: input, shape index: {}]   ;;  %s223_s3 = inlined_call_operand.hbm [shape: f32[16,32], index: 3, kind: output, shape index: {}]  }
   0x1   :  { %9 = vsyncpa [#allocation4], 0  ;;  %s154_s12 = smov [#allocation2]   ;;  %s106_s16 = scalar_lea.hbm %s220_s0, 256 }
   0x2   :  { %s15_s13 = sshll.u32 %s154_s12, 4  ;;  %p107_p0 = scmp.ne.s32.totalorder %s220_s0, %s106_s16  ;;  %s16_s13 = int_to_ptr.vmem [resolvable:$true] %s15_s13 }
   0x3   :  { %p110_p1 = scmp.lt.u32.totalorder %s106_s16, %s220_s0 }
   0x5   :  { %p112_p2 = pnand %p110_p1, %p107_p0 }
   0x7   :  { %115 = shalt.err (!%p112_p2)
}
   0x8   :  { %s116_s21 = scalar_lea.vmem %s16_s13, 256  ;;  %p121_p4 = scmp.lt.s32.totalorder %s16_s13, %s16_s13 }
   0x9   :  { %p117_p3 = scmp.ne.s32.totalorder %s16_s13, %s116_s21  ;;  %p122_p5 = scmp.lt.s32.totalorder %s116_s21, %s116_s21 }
   0xb   :  { %p123_p6 = por %p122_p5, %p121_p4 }
   0xd   :  { %p124_p7 = pnand %p123_p6, %p117_p3 }
   0xf   :  { %127 = shalt.err (!%p124_p7)
}
  0x10   :  { %s155_s22 = smov 128   ;;  %s156_s23 = smov 8  }
  0x11   :  { %21 = dma.hbm_to_vmem [thread:$0]  %s220_s0, 256, %s16_s13, [#allocation3], %s155_s22, %s155_s22, %s156_s23  }
  0x12   :  { %150 = dma.done.wait [#allocation3], 256  }
  0x13   :  { %151 = vsyncadd [#allocation3], 4294967040  ;;  %vm31_vm0 = vcmask 261120   ;;  %v29_v0 = vld [vmem:[#allocation2] sm:$0xff]  ;;  %v30_v1 = vld [vmem:[#allocation2 + $0x8] sm:$0xff]  ;;  %s157_s29 = smov [#allocation5]  }
  0x14   :  { %v32_v2 = vsel %vm31_vm0, %v29_v0, 0.0  ;;  %v35_v3 = vsel %vm31_vm0, %v30_v1, 0.0  ;;  %v96_v21 = vld [vmem:[%s221_s1] ss:$0 sm:$0xff]  ;;  %s84_s30 = sshll.u32 %s157_s29, 4  ;;  %s85_s30 = int_to_ptr.vmem [resolvable:$true] %s84_s30 }
  0x15   :  { %33 = vadd.xlane.f32.xlu0 %v32_v2  ;;  %v97_v23 = vld [vmem:[%s222_s2] ss:$0 sm:$0xff]  ;;  %s128_s4 = scalar_lea.vmem %s85_s30, 256  ;;  %p133_p9 = scmp.lt.s32.totalorder %s85_s30, %s85_s30 }
  0x16   :  { %p129_p8 = scmp.ne.s32.totalorder %s85_s30, %s128_s4  ;;  %p134_p10 = scmp.lt.s32.totalorder %s128_s4, %s128_s4 }
  0x18   :  { %p135_p11 = por %p134_p10, %p133_p9 }
  0x19   :  { %36 = vadd.xlane.f32.xlu0 %v35_v3 }
  0x1a   :  { %p136_p12 = pnand %p135_p11, %p129_p8 }
  0xa2   :  { %v34_v4 = vpop.xlane.xlu0 %33 }
  0xa3   :  { %v39_v5 = vmul.f32 0.03125, %v34_v4 }
  0xa5   :  { %v41_v6 = vsub.f32 %v29_v0, %v39_v5 }
  0xa6   :  { %v37_v7 = vpop.xlane.xlu0 %36 }
  0xa7   :  { %v40_v8 = vmul.f32 0.03125, %v37_v7  ;;  %v43_v9 = vmul.f32 %v41_v6, %v41_v6 }
  0xa9   :  { %v42_v10 = vsub.f32 %v30_v1, %v40_v8  ;;  %v45_v11 = vsel %vm31_vm0, %v43_v9, 0.0 }
  0xaa   :  { %46 = vadd.xlane.f32.xlu1 %v45_v11 }
  0xab   :  { %v44_v12 = vmul.f32 %v42_v10, %v42_v10 }
  0xad   :  { %v48_v13 = vsel %vm31_vm0, %v44_v12, 0.0 }
  0xae   :  { %49 = vadd.xlane.f32.xlu1 %v48_v13 }
 0x137   :  { %v47_v14 = vpop.xlane.xlu1 %46 }
 0x138   :  { %v51_v15 = vmul.f32 0.03125, %v47_v14 }
 0x13a   :  { %v53_v16 = vadd.f32 1e-05, %v51_v15 }
 0x13b   :  { %v50_v17 = vpop.xlane.xlu1 %49 }
 0x13c   :  { %102 = vrsqrt.f32 %v53_v16  ;;  %v52_v18 = vmul.f32 0.03125, %v50_v17 }
 0x13e   :  { %v54_v19 = vadd.f32 1e-05, %v52_v18 }
 0x140   :  { %104 = vrsqrt.f32 %v54_v19 }
 0x146   :  { %v103_v20 = vpop.eup %102 }
 0x147   :  { %v57_v22 = vmul.f32 %v103_v20, %v41_v6 }
 0x149   :  { %v66_v24 = vmul.f32 %v96_v21, %v57_v22 }
 0x14a   :  { %v105_v25 = vpop.eup %104 }
 0x14b   :  { %v58_v26 = vmul.f32 %v105_v25, %v42_v10  ;;  %v75_v27 = vadd.f32 %v97_v23, %v66_v24 }
 0x14d   :  { %v67_v28 = vmul.f32 %v96_v21, %v58_v26  ;;  %77 = vst.msk [vmem:[#allocation5] sm:$0xff] %vm31_vm0, %v75_v27 }
 0x14f   :  { %v76_v29 = vadd.f32 %v97_v23, %v67_v28 }
 0x151   :  { %78 = vst.msk [vmem:[#allocation5 + $0x8] sm:$0xff] %vm31_vm0, %v76_v29 }
 0x152   :  { %139 = shalt.err (!%p136_p12)
}
 0x153   :  { %s140_s5 = scalar_lea.hbm %s223_s3, 256 }
 0x154   :  { %p141_p13 = scmp.ne.s32.totalorder %s223_s3, %s140_s5  ;;  %p144_p0 = scmp.lt.u32.totalorder %s140_s5, %s223_s3 }
 0x156   :  { %p146_p1 = pnand %p144_p0, %p141_p13 }
 0x158   :  { %149 = shalt.err (!%p146_p1)
}
 0x159   :  { %90 = dma.vmem_to_hbm [thread:$0]  %s85_s30, 256, %s223_s3, [#allocation4], %s155_s22, %s155_s22, %s156_s23  }
 0x15a   :  { %152 = dma.done.wait [#allocation4], 256  }
 0x15b   :  { %153 = vsyncadd [#allocation4], 4294967040 }
 0x15c   :  { %94 = vsyncpa [#allocation3], 1 }
 0x15d   :  { %95 = vsyncpa [#allocation4], 1 }

</bundles_post_ra>
